<compile_context>
chip_gen: v7x
topology: tpu7x:2x2x1
jax: 0.10.0
libtpu: 0.0.40
codegen_flags: <defaults>
</compile_context>

<pallas_src>
import jax
import jax.numpy as jnp
from jax.experimental import pallas as pl
from jax.experimental.pallas import tpu as pltpu

_LANES = 128


def _build_encoding(d_model: int, max_len: int) -> jnp.ndarray:
    """Deterministic sinusoidal table, matching the PyTorch __init__ exactly."""
    assert d_model % 2 == 0, "sinusoidal encoding needs even d_model (as in the PyTorch original)"
    position = jnp.arange(0, max_len, dtype=jnp.float32)[:, None]            # (max_len, 1)
    div_term = jnp.exp(jnp.arange(0, d_model, 2, dtype=jnp.float32)
                       * (-jnp.log(10000.0) / d_model))                       # (d_model//2,)
    enc = jnp.zeros((max_len, d_model), dtype=jnp.float32)
    enc = enc.at[:, 0::2].set(jnp.sin(position * div_term))
    enc = enc.at[:, 1::2].set(jnp.cos(position * div_term))
    return enc                                                                 # (max_len, d_model)


def _pos_enc_kernel(x_ref, enc_ref, o_ref):
    # x_ref/o_ref: (bt, rt, 128); enc_ref: (1, rt, 128) shared slab, broadcast
    # over the leading (batch) dim.  Pure VPU add, bandwidth bound.
    o_ref[...] = x_ref[...] + enc_ref[...]


def _target_tile_bytes() -> int:
    """Per-buffer x-tile budget, chosen per TPU generation."""
    try:
        info = pltpu.get_tpu_info()
        # v7x: 64 MiB VMEM/core but ~3.2 TB/s HBM -> bigger tiles to amortize
        # the ~0.35us per-grid-step overhead.  v5e/v6e (128 MiB VMEM): 2 MiB is
        # already at the HBM roofline and safe under the 16 MiB scoped default.
        if info.vmem_capacity_bytes <= (96 << 20):
            return 4 << 20
    except Exception:
        pass
    return 2 << 20


def _choose_tiles(batch: int, rows: int, itemsize: int, target_bytes: int):
    """Pick (batch_tile, row_tile) for (bt, rt, 128) blocks.

    VMEM per x block = bt * rt * 128 * itemsize exactly: the last two block
    dims are already (8,128)-tile aligned (or full-extent), so there is no
    hidden sublane padding in the accounting.
    """
    bytes_per_row = _LANES * itemsize
    # Batch tile: only shrink if even an 8-row slab per batch row overflows.
    bt = batch
    max_bt = max(1, target_bytes // (8 * bytes_per_row))
    if bt > max_bt:
        bt = max_bt
    # Row tile: as many rows as fit, multiple of 8 (or the full extent).
    rt = max(8, (target_bytes // (bt * bytes_per_row)) // 8 * 8)
    if rt >= rows:
        rt = rows
        # Keep >= ~4 grid steps on mid-size inputs so both v7x TensorCores
        # engage and load/compute/store overlap (neutral on v5e/v6e).
        if bt == batch and rows >= 64:
            rt = max(8, (rows // 4) // 8 * 8)
    return bt, rt


def positional_encoding_forward(x: jnp.ndarray, encoding: jnp.ndarray, *,
                                donate_x: bool = False) -> jnp.ndarray:
    """x: (batch, seq_len, d_model); encoding: (max_len, d_model)."""
    batch, seq_len, d_model = x.shape
    max_len = encoding.shape[0]
    assert seq_len <= max_len, f"seq_len={seq_len} exceeds max_len={max_len}"
    assert encoding.shape[1] == d_model

    # Static slice; cast only if dtypes differ (precompute the table in
    # x.dtype at init to make this a no-op).  NOTE: torch promotes bf16 x +
    # f32 table to f32; here the add stays in x.dtype (bit-identical for f32).
    enc = encoding[:seq_len, :]
    if enc.dtype != x.dtype:
        enc = enc.astype(x.dtype)

    itemsize = jnp.dtype(x.dtype).itemsize
    flat_len = seq_len * d_model
    flat_pad = ((flat_len + _LANES - 1) // _LANES) * _LANES
    rows = flat_pad // _LANES

    x2d = x.reshape(batch, flat_len)            # row-major reshape: free
    enc2d = enc.reshape(1, flat_len)
    if flat_pad != flat_len:
        # TODO(synk): pad fallback copies x once; typical transformer shapes
        # keep seq_len*d_model a multiple of 128 so this path is rarely taken.
        pad = flat_pad - flat_len
        x2d = jnp.pad(x2d, ((0, 0), (0, pad)))
        enc2d = jnp.pad(enc2d, ((0, 0), (0, pad)))
    x3d = x2d.reshape(batch, rows, _LANES)
    enc3d = enc2d.reshape(1, rows, _LANES)

    bt, rt = _choose_tiles(batch, rows, itemsize, _target_tile_bytes())
    grid = (pl.cdiv(batch, bt), pl.cdiv(rows, rt))

    # Exact double-buffered footprint: 2 x-in + 2 out + 2 enc buffers.
    footprint = (4 * bt + 2) * rt * _LANES * itemsize
    vmem_limit = int(max(footprint + (4 << 20), 16 << 20))

    out3d = pl.pallas_call(
        _pos_enc_kernel,
        out_shape=jax.ShapeDtypeStruct((batch, rows, _LANES), x.dtype),
        grid=grid,
        in_specs=[
            pl.BlockSpec((bt, rt, _LANES), lambda b, i: (b, i, 0)),   # x tile
            pl.BlockSpec((1, rt, _LANES), lambda b, i: (0, i, 0)),    # enc slab
        ],
        out_specs=pl.BlockSpec((bt, rt, _LANES), lambda b, i: (b, i, 0)),
        compiler_params=pltpu.CompilerParams(
            dimension_semantics=("parallel", "parallel"),
            vmem_limit_bytes=vmem_limit,
        ),
        cost_estimate=pl.CostEstimate(
            flops=batch * flat_len,
            transcendentals=0,
            bytes_accessed=(2 * batch * flat_len + flat_len) * itemsize,
        ),
        input_output_aliases=({0: 0} if donate_x else {}),
    )(x3d, enc3d)

    out2d = out3d.reshape(batch, flat_pad)
    if flat_pad != flat_len:
        out2d = out2d[:, :flat_len]
    return out2d.reshape(batch, seq_len, d_model)


class PositionalEncoding:
    """Mirror of the PyTorch module: holds the precomputed table."""

    def __init__(self, d_model: int, max_len: int = 5000, dtype=jnp.float32):
        # Precompute (and pre-cast) at init so forward does no table work.
        self.encoding = _build_encoding(d_model, max_len).astype(dtype)

    def __call__(self, x: jnp.ndarray, donate_x: bool = False) -> jnp.ndarray:
        return positional_encoding_forward(x, self.encoding, donate_x=donate_x)


if __name__ == "__main__":
    key = jax.random.PRNGKey(0)

    # Primary demo shape (matches the module's intended use).
    batch, seq_len, d_model, max_len = 2, 8, 32, 64
    x = jax.random.normal(key, (batch, seq_len, d_model), dtype=jnp.float32)
    module = PositionalEncoding(d_model, max_len)
    out = jax.block_until_ready(module(x))
    ref = x + module.encoding[None, :seq_len, :]
    assert out.shape == (batch, seq_len, d_model)
    assert jnp.allclose(out, ref, atol=1e-6), "mismatch vs reference (primary)"

    # Exercise the multi-row-tile path (rows >= 64 -> grid with 4 row steps).
    k1, k2 = jax.random.split(key)
    x2 = jax.random.normal(k1, (2, 64, 128), dtype=jnp.float32)
    m2 = PositionalEncoding(128, 128)
    out2 = jax.block_until_ready(m2(x2))
    ref2 = x2 + m2.encoding[None, :64, :]
    assert jnp.allclose(out2, ref2, atol=1e-6), "mismatch vs reference (multi-tile)"

    # Exercise the lane-padding fallback (seq_len*d_model not a multiple of 128).
    x3 = jax.random.normal(k2, (3, 5, 26), dtype=jnp.float32)
    m3 = PositionalEncoding(26, 16)
    out3 = jax.block_until_ready(m3(x3))
    ref3 = x3 + m3.encoding[None, :5, :]
    assert jnp.allclose(out3, ref3, atol=1e-6), "mismatch vs reference (padded)"

    print("KERNEL_OK")
</pallas_src>

<mosaic_0001>
module attributes {stable_mosaic.version = 11 : i64} {
  func.func @_pos_enc_kernel(%arg0: i32, %arg1: i32, %arg2: memref<2x2x128xf32, #tpu.memory_space<vmem>>, %arg3: memref<1x2x128xf32, #tpu.memory_space<vmem>>, %arg4: memref<2x2x128xf32, #tpu.memory_space<vmem>>) attributes {dimension_semantics = [#tpu.dimension_semantics<parallel>, #tpu.dimension_semantics<parallel>], iteration_bounds = array<i64: 1, 1>, scalar_prefetch = 0 : i64, scratch_operands = 0 : i64, tpu.core_type = #tpu.core_type<tc>, window_params = [{transform_indices = @transform_0, window_bounds = array<i64: 2, 2, 128>}, {transform_indices = @transform_1, window_bounds = array<i64: 1, 2, 128>}, {transform_indices = @transform_2, window_bounds = array<i64: 2, 2, 128>}]} {
    %c0 = arith.constant 0 : index
    %c0_0 = arith.constant 0 : index
    %c0_1 = arith.constant 0 : index
    %0 = vector.load %arg2[%c0, %c0_0, %c0_1] : memref<2x2x128xf32, #tpu.memory_space<vmem>>, vector<2x2x128xf32>
    %c0_2 = arith.constant 0 : index
    %c0_3 = arith.constant 0 : index
    %c0_4 = arith.constant 0 : index
    %1 = vector.load %arg3[%c0_2, %c0_3, %c0_4] : memref<1x2x128xf32, #tpu.memory_space<vmem>>, vector<1x2x128xf32>
    %2 = vector.broadcast %1 : vector<1x2x128xf32> to vector<2x2x128xf32>
    %3 = arith.addf %0, %2 : vector<2x2x128xf32>
    %c0_5 = arith.constant 0 : index
    %c0_6 = arith.constant 0 : index
    %c0_7 = arith.constant 0 : index
    %4 = vector.load %arg4[%c0_5, %c0_6, %c0_7] : memref<2x2x128xf32, #tpu.memory_space<vmem>>, vector<2x2x128xf32>
    tpu.vector_store %arg4[%c0_5, %c0_6, %c0_7], %3 {strides = array<i32>} : memref<2x2x128xf32, #tpu.memory_space<vmem>>, vector<2x2x128xf32>,
    return
  }
  func.func @transform_0(%arg0: i32, %arg1: i32) -> (i32, i32, i32) {
    %c0_i32 = arith.constant 0 : i32
    %c0_i32_0 = arith.constant 0 : i32
    return %arg0, %arg1, %c0_i32 : i32, i32, i32
  }
  func.func @transform_1(%arg0: i32, %arg1: i32) -> (i32, i32, i32) {
    %c0_i32 = arith.constant 0 : i32
    %c0_i32_0 = arith.constant 0 : i32
    %c0_i32_1 = arith.constant 0 : i32
    return %c0_i32, %arg1, %c0_i32_0 : i32, i32, i32
  }
  func.func @transform_2(%arg0: i32, %arg1: i32) -> (i32, i32, i32) {
    %c0_i32 = arith.constant 0 : i32
    %c0_i32_0 = arith.constant 0 : i32
    return %arg0, %arg1, %c0_i32 : i32, i32, i32
  }
}

</mosaic_0001>

<bundles_post_ra>
// kernel: tpu_custom_call.1
= control target key start
LH: loop header
LB: loop body
LE: loop exit
PB: predicated region body
PF: predicated region fallthrough
CT: control target
= control target key end

     0   :  { %7 = vsyncpa [#allocation3], 0  ;;  %s154_s0 = inlined_call_operand.hbm [shape: f32[2,2,128], index: 0, kind: input, shape index: {}]   ;;  %s155_s1 = inlined_call_operand.vmem [shape: f32[1,2,128], index: 1, kind: input, shape index: {}]   ;;  %s156_s2 = inlined_call_operand.hbm [shape: f32[2,2,128], index: 2, kind: output, shape index: {}]  }
   0x1   :  { %8 = vsyncpa [#allocation4], 0  ;;  %s102_s9 = smov [#allocation2]   ;;  %s54_s13 = scalar_lea.hbm %s154_s0, 64 }
   0x2   :  { %s14_s10 = sshll.u32 %s102_s9, 4  ;;  %p55_p0 = scmp.ne.s32.totalorder %s154_s0, %s54_s13  ;;  %s15_s10 = int_to_ptr.vmem [resolvable:$true] %s14_s10 }
   0x3   :  { %p58_p1 = scmp.lt.u32.totalorder %s54_s13, %s154_s0 }
   0x5   :  { %p60_p2 = pnand %p58_p1, %p55_p0 }
   0x7   :  { %63 = shalt.err (!%p60_p2)
}
   0x8   :  { %s64_s18 = scalar_lea.vmem %s15_s10, 64  ;;  %p69_p4 = scmp.lt.s32.totalorder %s15_s10, %s15_s10 }
   0x9   :  { %p65_p3 = scmp.ne.s32.totalorder %s15_s10, %s64_s18  ;;  %p70_p5 = scmp.lt.s32.totalorder %s64_s18, %s64_s18 }
   0xb   :  { %p71_p6 = por %p70_p5, %p69_p4 }
   0xd   :  { %p72_p7 = pnand %p71_p6, %p65_p3 }
   0xf   :  { %75 = shalt.err (!%p72_p7)
}
  0x10   :  { %s103_s19 = smov 32   ;;  %s104_s20 = smov 2  }
  0x11   :  { %20 = dma.hbm_to_vmem [thread:$0]  %s154_s0, 64, %s15_s10, [#allocation3], %s103_s19, %s103_s19, %s104_s20  }
  0x12   :  { %98 = dma.done.wait [#allocation3], 64  }
  0x13   :  { %99 = vsyncadd [#allocation3], 4294967232  ;;  %s105_s23 = smov [#allocation5]   ;;  %v26_v0 = vld [vmem:[#allocation2] sm:$0x3] }
  0x14   :  { %s38_s24 = sshll.u32 %s105_s23, 4  ;;  %v28_v1 = vld [vmem:[%s155_s1] sm:$0x3]  ;;  %v27_v2 = vld [vmem:[#allocation2 + $0x2] sm:$0x3]  ;;  %s39_s24 = int_to_ptr.vmem [resolvable:$true] %s38_s24 }
  0x15   :  { %v29_v3 = vadd.f32 %v28_v1, %v26_v0  ;;  %v30_v4 = vadd.f32 %v28_v1, %v27_v2  ;;  %s76_s27 = scalar_lea.vmem %s39_s24, 64  ;;  %p81_p9 = scmp.lt.s32.totalorder %s39_s24, %s39_s24 }
  0x16   :  { %p77_p8 = scmp.ne.s32.totalorder %s39_s24, %s76_s27  ;;  %p82_p10 = scmp.lt.s32.totalorder %s76_s27, %s76_s27 }
  0x17   :  { %31 = vst [vmem:[#allocation5] sm:$0x3] %v29_v3  ;;  %32 = vst [vmem:[#allocation5 + $0x2] sm:$0x3] %v30_v4 }
  0x18   :  { %p83_p11 = por %p82_p10, %p81_p9 }
  0x1a   :  { %p84_p12 = pnand %p83_p11, %p77_p8 }
  0x1c   :  { %87 = shalt.err (!%p84_p12)
}
  0x1d   :  { %s88_s29 = scalar_lea.hbm %s156_s2, 64 }
  0x1e   :  { %p89_p13 = scmp.ne.s32.totalorder %s156_s2, %s88_s29  ;;  %p92_p0 = scmp.lt.u32.totalorder %s88_s29, %s156_s2 }
  0x20   :  { %p94_p1 = pnand %p92_p0, %p89_p13 }
  0x22   :  { %97 = shalt.err (!%p94_p1)
}
  0x23   :  { %44 = dma.vmem_to_hbm [thread:$0]  %s39_s24, 64, %s156_s2, [#allocation4], %s103_s19, %s103_s19, %s104_s20  }
  0x24   :  { %100 = dma.done.wait [#allocation4], 64  }
  0x25   :  { %101 = vsyncadd [#allocation4], 4294967232 }
  0x26   :  { %48 = vsyncpa [#allocation3], 1 }
  0x27   :  { %49 = vsyncpa [#allocation4], 1 }

</bundles_post_ra>
